<compile_context>
chip_gen: v7x
topology: tpu7x:2x2x1
jax: 0.10.0
libtpu: 0.0.40
codegen_flags: <defaults>
</compile_context>

<pallas_src>
import functools

import jax
import jax.numpy as jnp
from jax import lax
from jax.experimental import pallas as pl
from jax.experimental.pallas import tpu as pltpu

GATE_PAD = 128  # per-gate lane padding = one full vreg lane width / MXU column tile


def dkt_gru_kernel(tok_ref, proj_ref, w_hh_ref, b_n_ref, w_fc_ref, b_fc_ref,
                   out_ref, h_ref, *, seq_len, unroll):
    """One (batch-block, time-tile) grid step of the GRU recurrence.

    tok_ref  : (Tt, bt, 1) int32  token ids for this tile (time-major).
    proj_ref : (Vp, 3G) f32       VMEM-resident pre-projected embedding table:
                                  emb @ W_ih + b_ih + [b_hh_r, b_hh_z, 0],
                                  each gate slot padded to G=128 lanes.
    w_hh_ref : (G, 3G) f32        packed recurrent weights, gate slots 128-lane
                                  aligned, rows/cols >= H zero-padded.
    b_n_ref  : (1, G) f32         recurrent bias of the n gate (padded).
    w_fc_ref : (G, 1), b_fc_ref: (1, 1)  final Linear (rows >= H zero).
    out_ref  : (bt, 1)            sigmoid(fc(h_T)).
    h_ref    : (bt, G) f32 VMEM scratch -- hidden state carried across t-tiles
                                  (lanes >= H stay exactly zero).
    """
    t_idx = pl.program_id(1)
    n_t = pl.num_programs(1)
    t_tile, bt, _ = tok_ref.shape
    vocab_pad = proj_ref.shape[0]
    G = GATE_PAD

    @pl.when(t_idx == 0)
    def _init():
        h_ref[...] = jnp.zeros_like(h_ref)

    # Loop-invariant values hoisted out of the recurrence (a couple of vregs).
    b_n = jnp.broadcast_to(b_n_ref[...], (bt, G))
    iota_v = lax.broadcasted_iota(jnp.int32, (bt, vocab_pad), 1)
    t_base = t_idx * t_tile
    has_padding = (seq_len % t_tile) != 0          # static

    def step(t, h):
        # In-kernel embedding gather as a one-hot matmul on the MXU: exact
        # (all non-selected products are literal 0.0) and off the h-chain, so
        # the scheduler overlaps it with the previous step's gate math.
        tok_t = tok_ref[t]                                             # (bt, 1)
        oh = (tok_t == iota_v).astype(jnp.float32)                     # (bt, Vp)
        gx = jnp.dot(oh, proj_ref[...], preferred_element_type=jnp.float32)
        # Single fused recurrent matmul; gates come out as vreg-aligned slices.
        gh = jnp.dot(h, w_hh_ref[...], preferred_element_type=jnp.float32)
        r = jax.nn.sigmoid(gx[:, 0:G] + gh[:, 0:G])
        z = jax.nn.sigmoid(gx[:, G:2 * G] + gh[:, G:2 * G])
        n = jnp.tanh(gx[:, 2 * G:3 * G] + r * (gh[:, 2 * G:3 * G] + b_n))
        h_new = (1.0 - z) * n + z * h
        if has_padding:
            # Only emitted when (zero-)padded tail timesteps exist.
            h_new = jnp.where((t_base + t) < seq_len, h_new, h)
        return h_new

    h = lax.fori_loop(0, t_tile, step, h_ref[...], unroll=unroll)
    h_ref[...] = h

    @pl.when(t_idx == n_t - 1)
    def _finalize():
        logits = jnp.dot(h_ref[...], w_fc_ref[...],
                         preferred_element_type=jnp.float32) + b_fc_ref[...]
        out_ref[...] = jax.nn.sigmoid(logits)


def _round_up(x, m):
    return ((x + m - 1) // m) * m


def _pick_batch_tile(batch):
    # v7x has 2 TensorCores: give the "parallel" batch axis >= 2 blocks when the
    # batch is big enough; otherwise one full-extent block (B may be < 8).
    if batch >= 16 and batch % 16 == 0:
        return batch // 2
    return batch


def dkt_forward(tokens, params, *, t_tile=None):
    """tokens: (B, T) int32 in [0, 2*num_skills). Returns sigmoid(fc(h_T)), shape (B, 1)."""
    emb_table, w_ih, w_hh, b_ih, b_hh, w_fc, b_fc = params
    B, T = tokens.shape
    vocab, H = emb_table.shape
    G = GATE_PAD

    # ---- Hoisted input projection (off the serial critical path). -------------
    # proj = emb @ W_ih + b_ih, with b_hh for the r/z gates folded in; b_hh_n
    # must stay separate (it sits inside r * (.)).  Each gate slot is padded to
    # 128 lanes so in-kernel gate extraction is a vreg-aligned static slice.
    bias_fold = jnp.concatenate(
        [b_hh[:, :2 * H], jnp.zeros((1, H), jnp.float32)], axis=1)
    proj = jnp.dot(emb_table, w_ih, preferred_element_type=jnp.float32) \
        + b_ih + bias_fold                                         # (vocab, 3H)
    vocab_pad = _round_up(vocab, 8)
    proj_pad = jnp.zeros((vocab_pad, 3, G), jnp.float32)
    proj_pad = proj_pad.at[:vocab, :, :H].set(proj.reshape(vocab, 3, H))
    proj_pad = proj_pad.reshape(vocab_pad, 3 * G)                  # (Vp, 3G)

    w_hh_pad = jnp.zeros((G, 3, G), jnp.float32)
    w_hh_pad = w_hh_pad.at[:H, :, :H].set(w_hh.reshape(H, 3, H))
    w_hh_pad = w_hh_pad.reshape(G, 3 * G)                          # (G, 3G)

    b_n_pad = jnp.zeros((1, G), jnp.float32).at[:, :H].set(b_hh[:, 2 * H:])
    w_fc_pad = jnp.zeros((G, 1), jnp.float32).at[:H, :].set(w_fc)

    # ---- Tiling. ---------------------------------------------------------------
    bt = _pick_batch_tile(B)
    nb = B // bt
    if t_tile is None:
        t_tile = min(T, 256)   # token tiles are tiny (4 B/step); amortize grid overhead
    nt = pl.cdiv(T, t_tile)
    T_pad = nt * t_tile
    unroll = min(t_tile, 8)    # capped unroll: LLO scheduling window w/o code blowup

    tok = jnp.transpose(tokens.astype(jnp.int32)).reshape(T, B, 1)  # time-major
    if T_pad != T:
        tok = jnp.pad(tok, ((0, T_pad - T), (0, 0), (0, 0)))

    grid_spec = pltpu.PrefetchScalarGridSpec(
        num_scalar_prefetch=0,
        grid=(nb, nt),
        in_specs=[
            pl.BlockSpec((t_tile, bt, 1), lambda b, t: (t, b, 0)),    # token ids
            pl.BlockSpec((vocab_pad, 3 * G), lambda b, t: (0, 0)),    # proj (resident)
            pl.BlockSpec((G, 3 * G), lambda b, t: (0, 0)),            # w_hh (resident)
            pl.BlockSpec((1, G), lambda b, t: (0, 0)),                # b_hh_n
            pl.BlockSpec((G, 1), lambda b, t: (0, 0)),                # w_fc
            pl.BlockSpec((1, 1), lambda b, t: (0, 0)),                # b_fc
        ],
        out_specs=pl.BlockSpec((bt, 1), lambda b, t: (b, 0)),
        scratch_shapes=[pltpu.VMEM((bt, G), jnp.float32)],            # hidden state
    )

    return pl.pallas_call(
        functools.partial(dkt_gru_kernel, seq_len=T, unroll=unroll),
        out_shape=jax.ShapeDtypeStruct((B, 1), jnp.float32),
        grid_spec=grid_spec,
        compiler_params=pltpu.CompilerParams(
            dimension_semantics=("parallel", "arbitrary")),
    )(tok, proj_pad, w_hh_pad, b_n_pad, w_fc_pad, b_fc)


def dkt_reference(tokens, params):
    """Pure-JAX reference mirroring torch.nn.GRU (batch_first) semantics."""
    emb_table, w_ih, w_hh, b_ih, b_hh, w_fc, b_fc = params
    H = emb_table.shape[1]
    embedded = jnp.take(emb_table, tokens, axis=0)         # (B, T, H)
    B, T, _ = embedded.shape

    def step(h, x_t):
        gx = x_t @ w_ih + b_ih
        gh = h @ w_hh + b_hh
        r = jax.nn.sigmoid(gx[:, 0:H] + gh[:, 0:H])
        z = jax.nn.sigmoid(gx[:, H:2 * H] + gh[:, H:2 * H])
        n = jnp.tanh(gx[:, 2 * H:3 * H] + r * gh[:, 2 * H:3 * H])
        h_new = (1.0 - z) * n + z * h
        return h_new, None

    h0 = jnp.zeros((B, H), dtype=jnp.float32)
    h_final, _ = lax.scan(step, h0, jnp.transpose(embedded, (1, 0, 2)))
    return jax.nn.sigmoid(h_final @ w_fc + b_fc)


def init_params(key, num_skills, hidden_dim):
    vocab = num_skills * 2
    ks = jax.random.split(key, 7)
    scale = 1.0 / jnp.sqrt(hidden_dim)
    emb_table = jax.random.normal(ks[0], (vocab, hidden_dim), jnp.float32) * 0.5
    # Stored transposed relative to torch (torch: (3H, H); here: (H, 3H)), gate order r,z,n.
    w_ih = jax.random.uniform(ks[1], (hidden_dim, 3 * hidden_dim), jnp.float32, -scale, scale)
    w_hh = jax.random.uniform(ks[2], (hidden_dim, 3 * hidden_dim), jnp.float32, -scale, scale)
    b_ih = jax.random.uniform(ks[3], (1, 3 * hidden_dim), jnp.float32, -scale, scale)
    b_hh = jax.random.uniform(ks[4], (1, 3 * hidden_dim), jnp.float32, -scale, scale)
    w_fc = jax.random.uniform(ks[5], (hidden_dim, 1), jnp.float32, -scale, scale)
    b_fc = jax.random.uniform(ks[6], (1, 1), jnp.float32, -scale, scale)
    return (emb_table, w_ih, w_hh, b_ih, b_hh, w_fc, b_fc)


if __name__ == "__main__":
    num_skills = 10
    hidden_dim = 64          # matches the PyTorch spec

    key = jax.random.PRNGKey(0)
    pkey, tkey = jax.random.split(key)
    params = init_params(pkey, num_skills, hidden_dim)

    # Case 1: the exact input from the spec (batch=1, seq=5) -> exercises the
    # multi-tile time grid AND the padded-last-tile path (t_tile=4, T_pad=8).
    tokens_spec = jnp.array([[1, 3, 5, 2, 4]], dtype=jnp.int32)
    out_spec = jax.block_until_ready(dkt_forward(tokens_spec, params, t_tile=4))
    ref_spec = jax.block_until_ready(dkt_reference(tokens_spec, params))
    assert out_spec.shape == (1, 1)
    assert jnp.allclose(out_spec, ref_spec, atol=2e-5, rtol=2e-5), (out_spec, ref_spec)

    # Case 2: batch=2, seq=8, explicit t_tile -> multi-tile T grid, no padding.
    tokens_b = jax.random.randint(tkey, (2, 8), 0, num_skills * 2, dtype=jnp.int32)
    out_b = jax.block_until_ready(dkt_forward(tokens_b, params, t_tile=4))
    ref_b = jax.block_until_ready(dkt_reference(tokens_b, params))
    assert out_b.shape == (2, 1)
    assert jnp.allclose(out_b, ref_b, atol=2e-5, rtol=2e-5), (out_b, ref_b)

    # Case 3: same input with the default t_tile -> single time tile (nt=1),
    # init and finalize in the same grid step.
    out_d = jax.block_until_ready(dkt_forward(tokens_b, params))
    assert out_d.shape == (2, 1)
    assert jnp.allclose(out_d, ref_b, atol=2e-5, rtol=2e-5), (out_d, ref_b)

    print("KERNEL_OK")
</pallas_src>

<mosaic_0001>
module attributes {stable_mosaic.version = 11 : i64} {
  func.func @dkt_gru_kernel(%arg0: i32, %arg1: i32, %arg2: memref<4x1x1xi32, #tpu.memory_space<vmem>>, %arg3: memref<24x384xf32, #tpu.memory_space<vmem>>, %arg4: memref<128x384xf32, #tpu.memory_space<vmem>>, %arg5: memref<1x128xf32, #tpu.memory_space<vmem>>, %arg6: memref<128x1xf32, #tpu.memory_space<vmem>>, %arg7: memref<1x1xf32, #tpu.memory_space<vmem>>, %arg8: memref<1x1xf32, #tpu.memory_space<vmem>>, %arg9: memref<1x128xf32, #tpu.memory_space<vmem>>) attributes {dimension_semantics = [#tpu.dimension_semantics<parallel>, #tpu.dimension_semantics<arbitrary>], iteration_bounds = array<i64: 1, 2>, scalar_prefetch = 0 : i64, scratch_operands = 1 : i64, tpu.core_type = #tpu.core_type<tc>, window_params = [{transform_indices = @transform_0, window_bounds = array<i64: 4, 1, 1>}, {pipeline_mode = #tpu.pipeline_mode<synchronous>, transform_indices = @transform_1, window_bounds = array<i64: 24, 384>}, {pipeline_mode = #tpu.pipeline_mode<synchronous>, transform_indices = @transform_2, window_bounds = array<i64: 128, 384>}, {pipeline_mode = #tpu.pipeline_mode<synchronous>, transform_indices = @transform_3, window_bounds = array<i64: 1, 128>}, {pipeline_mode = #tpu.pipeline_mode<synchronous>, transform_indices = @transform_4, window_bounds = array<i64: 128, 1>}, {pipeline_mode = #tpu.pipeline_mode<synchronous>, transform_indices = @transform_5, window_bounds = array<i64: 1, 1>}, {transform_indices = @transform_6, window_bounds = array<i64: 1, 1>}]} {
    %c0_i32 = arith.constant 0 : i32
    %0 = arith.cmpi eq, %arg1, %c0_i32 : i32
    %1 = arith.extui %0 : i1 to i32
    %c0_i32_0 = arith.constant 0 : i32
    %2 = arith.cmpi ne, %1, %c0_i32_0 : i32
    scf.if %2 {
      %cst_56 = arith.constant 0.000000e+00 : f32
      %175 = vector.broadcast %cst_56 : f32 to vector<1x128xf32>
      %c0_57 = arith.constant 0 : index
      %c0_58 = arith.constant 0 : index
      %176 = vector.load %arg9[%c0_57, %c0_58] : memref<1x128xf32, #tpu.memory_space<vmem>>, vector<1x128xf32>
      tpu.vector_store %arg9[%c0_57, %c0_58], %175 {strides = array<i32>} : memref<1x128xf32, #tpu.memory_space<vmem>>, vector<1x128xf32>,
    } else {
    }
    %c0 = arith.constant 0 : index
    %c0_1 = arith.constant 0 : index
    %3 = vector.load %arg5[%c0, %c0_1] : memref<1x128xf32, #tpu.memory_space<vmem>>, vector<1x128xf32>
    %4 = tpu.iota {dimensions = array<i32: 1>} : vector<1x24xi32>
    %c4_i32 = arith.constant 4 : i32
    %5 = arith.muli %arg1, %c4_i32 : i32
    %c0_2 = arith.constant 0 : index
    %c0_3 = arith.constant 0 : index
    %6 = vector.load %arg9[%c0_2, %c0_3] : memref<1x128xf32, #tpu.memory_space<vmem>>, vector<1x128xf32>
    %c0_i32_4 = arith.constant 0 : i32
    %7 = arith.index_cast %c0_i32_4 : i32 to index
    %c0_5 = arith.constant 0 : index
    %c0_6 = arith.constant 0 : index
    %8 = vector.load %arg2[%7, %c0_5, %c0_6] : memref<4x1x1xi32, #tpu.memory_space<vmem>>, vector<1x1x1xi32>
    %9 = vector.shape_cast %8 : vector<1x1x1xi32> to vector<1x1xi32>
    %10 = vector.broadcast %9 : vector<1x1xi32> to vector<1x24xi32>
    %11 = arith.cmpi eq, %10, %4 : vector<1x24xi32>
    %12 = arith.extui %11 : vector<1x24xi1> to vector<1x24xi32>
    %13 = arith.sitofp %12 : vector<1x24xi32> to vector<1x24xf32>
    %c0_7 = arith.constant 0 : index
    %c0_8 = arith.constant 0 : index
    %14 = vector.load %arg3[%c0_7, %c0_8] : memref<24x384xf32, #tpu.memory_space<vmem>>, vector<24x384xf32>
    %cst = arith.constant dense<0.000000e+00> : vector<1x384xf32>
    %15 = tpu.matmul %13, %14, %cst {dimension_numbers = #tpu.dot_dimension_numbers<[1], [0], [0], [1], [0, 0, 1, 1], [], []>} : vector<1x24xf32>, vector<24x384xf32>, vector<1x384xf32> -> vector<1x384xf32>
    %c0_9 = arith.constant 0 : index
    %c0_10 = arith.constant 0 : index
    %16 = vector.load %arg4[%c0_9, %c0_10] : memref<128x384xf32, #tpu.memory_space<vmem>>, vector<128x384xf32>
    %cst_11 = arith.constant dense<0.000000e+00> : vector<1x384xf32>
    %17 = tpu.matmul %6, %16, %cst_11 {dimension_numbers = #tpu.dot_dimension_numbers<[1], [0], [0], [1], [0, 0, 1, 1], [], []>} : vector<1x128xf32>, vector<128x384xf32>, vector<1x384xf32> -> vector<1x384xf32>
    %18 = vector.extract_strided_slice %15 {offsets = [0, 0], sizes = [1, 128], strides = [1, 1]} : vector<1x384xf32> to vector<1x128xf32>
    %19 = vector.extract_strided_slice %17 {offsets = [0, 0], sizes = [1, 128], strides = [1, 1]} : vector<1x384xf32> to vector<1x128xf32>
    %20 = arith.addf %18, %19 : vector<1x128xf32>
    %21 = arith.negf %20 : vector<1x128xf32>
    %22 = math.exp %21 : vector<1x128xf32>
    %cst_12 = arith.constant 1.000000e+00 : f32
    %23 = vector.broadcast %cst_12 : f32 to vector<1x128xf32>
    %24 = arith.addf %23, %22 : vector<1x128xf32>
    %25 = arith.divf %23, %24 : vector<1x128xf32>
    %26 = vector.extract_strided_slice %15 {offsets = [0, 128], sizes = [1, 128], strides = [1, 1]} : vector<1x384xf32> to vector<1x128xf32>
    %27 = vector.extract_strided_slice %17 {offsets = [0, 128], sizes = [1, 128], strides = [1, 1]} : vector<1x384xf32> to vector<1x128xf32>
    %28 = arith.addf %26, %27 : vector<1x128xf32>
    %29 = arith.negf %28 : vector<1x128xf32>
    %30 = math.exp %29 : vector<1x128xf32>
    %cst_13 = arith.constant 1.000000e+00 : f32
    %31 = vector.broadcast %cst_13 : f32 to vector<1x128xf32>
    %32 = arith.addf %31, %30 : vector<1x128xf32>
    %33 = arith.divf %31, %32 : vector<1x128xf32>
    %34 = vector.extract_strided_slice %15 {offsets = [0, 256], sizes = [1, 128], strides = [1, 1]} : vector<1x384xf32> to vector<1x128xf32>
    %35 = vector.extract_strided_slice %17 {offsets = [0, 256], sizes = [1, 128], strides = [1, 1]} : vector<1x384xf32> to vector<1x128xf32>
    %36 = arith.addf %35, %3 : vector<1x128xf32>
    %37 = arith.mulf %25, %36 : vector<1x128xf32>
    %38 = arith.addf %34, %37 : vector<1x128xf32>
    %39 = math.tanh %38 : vector<1x128xf32>
    %cst_14 = arith.constant 1.000000e+00 : f32
    %40 = vector.broadcast %cst_14 : f32 to vector<1x128xf32>
    %41 = arith.subf %40, %33 : vector<1x128xf32>
    %42 = arith.mulf %41, %39 : vector<1x128xf32>
    %43 = arith.mulf %33, %6 : vector<1x128xf32>
    %44 = arith.addf %42, %43 : vector<1x128xf32>
    %45 = arith.addi %5, %c0_i32_4 : i32
    %c5_i32 = arith.constant 5 : i32
    %46 = arith.cmpi slt, %45, %c5_i32 : i32
    %47 = arith.select %46, %44, %6 : vector<1x128xf32>
    %c1_i32 = arith.constant 1 : i32
    %48 = arith.index_cast %c1_i32 : i32 to index
    %c0_15 = arith.constant 0 : index
    %c0_16 = arith.constant 0 : index
    %49 = vector.load %arg2[%48, %c0_15, %c0_16] : memref<4x1x1xi32, #tpu.memory_space<vmem>>, vector<1x1x1xi32>
    %50 = vector.shape_cast %49 : vector<1x1x1xi32> to vector<1x1xi32>
    %51 = vector.broadcast %50 : vector<1x1xi32> to vector<1x24xi32>
    %52 = arith.cmpi eq, %51, %4 : vector<1x24xi32>
    %53 = arith.extui %52 : vector<1x24xi1> to vector<1x24xi32>
    %54 = arith.sitofp %53 : vector<1x24xi32> to vector<1x24xf32>
    %c0_17 = arith.constant 0 : index
    %c0_18 = arith.constant 0 : index
    %55 = vector.load %arg3[%c0_17, %c0_18] : memref<24x384xf32, #tpu.memory_space<vmem>>, vector<24x384xf32>
    %cst_19 = arith.constant dense<0.000000e+00> : vector<1x384xf32>
    %56 = tpu.matmul %54, %55, %cst_19 {dimension_numbers = #tpu.dot_dimension_numbers<[1], [0], [0], [1], [0, 0, 1, 1], [], []>} : vector<1x24xf32>, vector<24x384xf32>, vector<1x384xf32> -> vector<1x384xf32>
    %c0_20 = arith.constant 0 : index
    %c0_21 = arith.constant 0 : index
    %57 = vector.load %arg4[%c0_20, %c0_21] : memref<128x384xf32, #tpu.memory_space<vmem>>, vector<128x384xf32>
    %cst_22 = arith.constant dense<0.000000e+00> : vector<1x384xf32>
    %58 = tpu.matmul %47, %57, %cst_22 {dimension_numbers = #tpu.dot_dimension_numbers<[1], [0], [0], [1], [0, 0, 1, 1], [], []>} : vector<1x128xf32>, vector<128x384xf32>, vector<1x384xf32> -> vector<1x384xf32>
    %59 = vector.extract_strided_slice %56 {offsets = [0, 0], sizes = [1, 128], strides = [1, 1]} : vector<1x384xf32> to vector<1x128xf32>
    %60 = vector.extract_strided_slice %58 {offsets = [0, 0], sizes = [1, 128], strides = [1, 1]} : vector<1x384xf32> to vector<1x128xf32>
    %61 = arith.addf %59, %60 : vector<1x128xf32>
    %62 = arith.negf %61 : vector<1x128xf32>
    %63 = math.exp %62 : vector<1x128xf32>
    %cst_23 = arith.constant 1.000000e+00 : f32
    %64 = vector.broadcast %cst_23 : f32 to vector<1x128xf32>
    %65 = arith.addf %64, %63 : vector<1x128xf32>
    %66 = arith.divf %64, %65 : vector<1x128xf32>
    %67 = vector.extract_strided_slice %56 {offsets = [0, 128], sizes = [1, 128], strides = [1, 1]} : vector<1x384xf32> to vector<1x128xf32>
    %68 = vector.extract_strided_slice %58 {offsets = [0, 128], sizes = [1, 128], strides = [1, 1]} : vector<1x384xf32> to vector<1x128xf32>
    %69 = arith.addf %67, %68 : vector<1x128xf32>
    %70 = arith.negf %69 : vector<1x128xf32>
    %71 = math.exp %70 : vector<1x128xf32>
    %cst_24 = arith.constant 1.000000e+00 : f32
    %72 = vector.broadcast %cst_24 : f32 to vector<1x128xf32>
    %73 = arith.addf %72, %71 : vector<1x128xf32>
    %74 = arith.divf %72, %73 : vector<1x128xf32>
    %75 = vector.extract_strided_slice %56 {offsets = [0, 256], sizes = [1, 128], strides = [1, 1]} : vector<1x384xf32> to vector<1x128xf32>
    %76 = vector.extract_strided_slice %58 {offsets = [0, 256], sizes = [1, 128], strides = [1, 1]} : vector<1x384xf32> to vector<1x128xf32>
    %77 = arith.addf %76, %3 : vector<1x128xf32>
    %78 = arith.mulf %66, %77 : vector<1x128xf32>
    %79 = arith.addf %75, %78 : vector<1x128xf32>
    %80 = math.tanh %79 : vector<1x128xf32>
    %cst_25 = arith.constant 1.000000e+00 : f32
    %81 = vector.broadcast %cst_25 : f32 to vector<1x128xf32>
    %82 = arith.subf %81, %74 : vector<1x128xf32>
    %83 = arith.mulf %82, %80 : vector<1x128xf32>
    %84 = arith.mulf %74, %47 : vector<1x128xf32>
    %85 = arith.addf %83, %84 : vector<1x128xf32>
    %86 = arith.addi %5, %c1_i32 : i32
    %c5_i32_26 = arith.constant 5 : i32
    %87 = arith.cmpi slt, %86, %c5_i32_26 : i32
    %88 = arith.select %87, %85, %47 : vector<1x128xf32>
    %c2_i32 = arith.constant 2 : i32
    %89 = arith.index_cast %c2_i32 : i32 to index
    %c0_27 = arith.constant 0 : index
    %c0_28 = arith.constant 0 : index
    %90 = vector.load %arg2[%89, %c0_27, %c0_28] : memref<4x1x1xi32, #tpu.memory_space<vmem>>, vector<1x1x1xi32>
    %91 = vector.shape_cast %90 : vector<1x1x1xi32> to vector<1x1xi32>
    %92 = vector.broadcast %91 : vector<1x1xi32> to vector<1x24xi32>
    %93 = arith.cmpi eq, %92, %4 : vector<1x24xi32>
    %94 = arith.extui %93 : vector<1x24xi1> to vector<1x24xi32>
    %95 = arith.sitofp %94 : vector<1x24xi32> to vector<1x24xf32>
    %c0_29 = arith.constant 0 : index
    %c0_30 = arith.constant 0 : index
    %96 = vector.load %arg3[%c0_29, %c0_30] : memref<24x384xf32, #tpu.memory_space<vmem>>, vector<24x384xf32>
    %cst_31 = arith.constant dense<0.000000e+00> : vector<1x384xf32>
    %97 = tpu.matmul %95, %96, %cst_31 {dimension_numbers = #tpu.dot_dimension_numbers<[1], [0], [0], [1], [0, 0, 1, 1], [], []>} : vector<1x24xf32>, vector<24x384xf32>, vector<1x384xf32> -> vector<1x384xf32>
    %c0_32 = arith.constant 0 : index
    %c0_33 = arith.constant 0 : index
    %98 = vector.load %arg4[%c0_32, %c0_33] : memref<128x384xf32, #tpu.memory_space<vmem>>, vector<128x384xf32>
    %cst_34 = arith.constant dense<0.000000e+00> : vector<1x384xf32>
    %99 = tpu.matmul %88, %98, %cst_34 {dimension_numbers = #tpu.dot_dimension_numbers<[1], [0], [0], [1], [0, 0, 1, 1], [], []>} : vector<1x128xf32>, vector<128x384xf32>, vector<1x384xf32> -> vector<1x384xf32>
    %100 = vector.extract_strided_slice %97 {offsets = [0, 0], sizes = [1, 128], strides = [1, 1]} : vector<1x384xf32> to vector<1x128xf32>
    %101 = vector.extract_strided_slice %99 {offsets = [0, 0], sizes = [1, 128], strides = [1, 1]} : vector<1x384xf32> to vector<1x128xf32>
    %102 = arith.addf %100, %101 : vector<1x128xf32>
    %103 = arith.negf %102 : vector<1x128xf32>
    %104 = math.exp %103 : vector<1x128xf32>
    %cst_35 = arith.constant 1.000000e+00 : f32
    %105 = vector.broadcast %cst_35 : f32 to vector<1x128xf32>
    %106 = arith.addf %105, %104 : vector<1x128xf32>
    %107 = arith.divf %105, %106 : vector<1x128xf32>
    %108 = vector.extract_strided_slice %97 {offsets = [0, 128], sizes = [1, 128], strides = [1, 1]} : vector<1x384xf32> to vector<1x128xf32>
    %109 = vector.extract_strided_slice %99 {offsets = [0, 128], sizes = [1, 128], strides = [1, 1]} : vector<1x384xf32> to vector<1x128xf32>
    %110 = arith.addf %108, %109 : vector<1x128xf32>
    %111 = arith.negf %110 : vector<1x128xf32>
    %112 = math.exp %111 : vector<1x128xf32>
    %cst_36 = arith.constant 1.000000e+00 : f32
    %113 = vector.broadcast %cst_36 : f32 to vector<1x128xf32>
    %114 = arith.addf %113, %112 : vector<1x128xf32>
    %115 = arith.divf %113, %114 : vector<1x128xf32>
    %116 = vector.extract_strided_slice %97 {offsets = [0, 256], sizes = [1, 128], strides = [1, 1]} : vector<1x384xf32> to vector<1x128xf32>
    %117 = vector.extract_strided_slice %99 {offsets = [0, 256], sizes = [1, 128], strides = [1, 1]} : vector<1x384xf32> to vector<1x128xf32>
    %118 = arith.addf %117, %3 : vector<1x128xf32>
    %119 = arith.mulf %107, %118 : vector<1x128xf32>
    %120 = arith.addf %116, %119 : vector<1x128xf32>
    %121 = math.tanh %120 : vector<1x128xf32>
    %cst_37 = arith.constant 1.000000e+00 : f32
    %122 = vector.broadcast %cst_37 : f32 to vector<1x128xf32>
    %123 = arith.subf %122, %115 : vector<1x128xf32>
    %124 = arith.mulf %123, %121 : vector<1x128xf32>
    %125 = arith.mulf %115, %88 : vector<1x128xf32>
    %126 = arith.addf %124, %125 : vector<1x128xf32>
    %127 = arith.addi %5, %c2_i32 : i32
    %c5_i32_38 = arith.constant 5 : i32
    %128 = arith.cmpi slt, %127, %c5_i32_38 : i32
    %129 = arith.select %128, %126, %88 : vector<1x128xf32>
    %c3_i32 = arith.constant 3 : i32
    %130 = arith.index_cast %c3_i32 : i32 to index
    %c0_39 = arith.constant 0 : index
    %c0_40 = arith.constant 0 : index
    %131 = vector.load %arg2[%130, %c0_39, %c0_40] : memref<4x1x1xi32, #tpu.memory_space<vmem>>, vector<1x1x1xi32>
    %132 = vector.shape_cast %131 : vector<1x1x1xi32> to vector<1x1xi32>
    %133 = vector.broadcast %132 : vector<1x1xi32> to vector<1x24xi32>
    %134 = arith.cmpi eq, %133, %4 : vector<1x24xi32>
    %135 = arith.extui %134 : vector<1x24xi1> to vector<1x24xi32>
    %136 = arith.sitofp %135 : vector<1x24xi32> to vector<1x24xf32>
    %c0_41 = arith.constant 0 : index
    %c0_42 = arith.constant 0 : index
    %137 = vector.load %arg3[%c0_41, %c0_42] : memref<24x384xf32, #tpu.memory_space<vmem>>, vector<24x384xf32>
    %cst_43 = arith.constant dense<0.000000e+00> : vector<1x384xf32>
    %138 = tpu.matmul %136, %137, %cst_43 {dimension_numbers = #tpu.dot_dimension_numbers<[1], [0], [0], [1], [0, 0, 1, 1], [], []>} : vector<1x24xf32>, vector<24x384xf32>, vector<1x384xf32> -> vector<1x384xf32>
    %c0_44 = arith.constant 0 : index
    %c0_45 = arith.constant 0 : index
    %139 = vector.load %arg4[%c0_44, %c0_45] : memref<128x384xf32, #tpu.memory_space<vmem>>, vector<128x384xf32>
    %cst_46 = arith.constant dense<0.000000e+00> : vector<1x384xf32>
    %140 = tpu.matmul %129, %139, %cst_46 {dimension_numbers = #tpu.dot_dimension_numbers<[1], [0], [0], [1], [0, 0, 1, 1], [], []>} : vector<1x128xf32>, vector<128x384xf32>, vector<1x384xf32> -> vector<1x384xf32>
    %141 = vector.extract_strided_slice %138 {offsets = [0, 0], sizes = [1, 128], strides = [1, 1]} : vector<1x384xf32> to vector<1x128xf32>
    %142 = vector.extract_strided_slice %140 {offsets = [0, 0], sizes = [1, 128], strides = [1, 1]} : vector<1x384xf32> to vector<1x128xf32>
    %143 = arith.addf %141, %142 : vector<1x128xf32>
    %144 = arith.negf %143 : vector<1x128xf32>
    %145 = math.exp %144 : vector<1x128xf32>
    %cst_47 = arith.constant 1.000000e+00 : f32
    %146 = vector.broadcast %cst_47 : f32 to vector<1x128xf32>
    %147 = arith.addf %146, %145 : vector<1x128xf32>
    %148 = arith.divf %146, %147 : vector<1x128xf32>
    %149 = vector.extract_strided_slice %138 {offsets = [0, 128], sizes = [1, 128], strides = [1, 1]} : vector<1x384xf32> to vector<1x128xf32>
    %150 = vector.extract_strided_slice %140 {offsets = [0, 128], sizes = [1, 128], strides = [1, 1]} : vector<1x384xf32> to vector<1x128xf32>
    %151 = arith.addf %149, %150 : vector<1x128xf32>
    %152 = arith.negf %151 : vector<1x128xf32>
    %153 = math.exp %152 : vector<1x128xf32>
    %cst_48 = arith.constant 1.000000e+00 : f32
    %154 = vector.broadcast %cst_48 : f32 to vector<1x128xf32>
    %155 = arith.addf %154, %153 : vector<1x128xf32>
    %156 = arith.divf %154, %155 : vector<1x128xf32>
    %157 = vector.extract_strided_slice %138 {offsets = [0, 256], sizes = [1, 128], strides = [1, 1]} : vector<1x384xf32> to vector<1x128xf32>
    %158 = vector.extract_strided_slice %140 {offsets = [0, 256], sizes = [1, 128], strides = [1, 1]} : vector<1x384xf32> to vector<1x128xf32>
    %159 = arith.addf %158, %3 : vector<1x128xf32>
    %160 = arith.mulf %148, %159 : vector<1x128xf32>
    %161 = arith.addf %157, %160 : vector<1x128xf32>
    %162 = math.tanh %161 : vector<1x128xf32>
    %cst_49 = arith.constant 1.000000e+00 : f32
    %163 = vector.broadcast %cst_49 : f32 to vector<1x128xf32>
    %164 = arith.subf %163, %156 : vector<1x128xf32>
    %165 = arith.mulf %164, %162 : vector<1x128xf32>
    %166 = arith.mulf %156, %129 : vector<1x128xf32>
    %167 = arith.addf %165, %166 : vector<1x128xf32>
    %168 = arith.addi %5, %c3_i32 : i32
    %c5_i32_50 = arith.constant 5 : i32
    %169 = arith.cmpi slt, %168, %c5_i32_50 : i32
    %170 = arith.select %169, %167, %129 : vector<1x128xf32>
    %c4_i32_51 = arith.constant 4 : i32
    %c0_52 = arith.constant 0 : index
    %c0_53 = arith.constant 0 : index
    %171 = vector.load %arg9[%c0_52, %c0_53] : memref<1x128xf32, #tpu.memory_space<vmem>>, vector<1x128xf32>
    tpu.vector_store %arg9[%c0_52, %c0_53], %170 {strides = array<i32>} : memref<1x128xf32, #tpu.memory_space<vmem>>, vector<1x128xf32>,
    %c1_i32_54 = arith.constant 1 : i32
    %172 = arith.cmpi eq, %arg1, %c1_i32_54 : i32
    %173 = arith.extui %172 : i1 to i32
    %c0_i32_55 = arith.constant 0 : i32
    %174 = arith.cmpi ne, %173, %c0_i32_55 : i32
    scf.if %174 {
      %c0_56 = arith.constant 0 : index
      %c0_57 = arith.constant 0 : index
      %175 = vector.load %arg9[%c0_56, %c0_57] : memref<1x128xf32, #tpu.memory_space<vmem>>, vector<1x128xf32>
      %c0_58 = arith.constant 0 : index
      %c0_59 = arith.constant 0 : index
      %176 = vector.load %arg6[%c0_58, %c0_59] : memref<128x1xf32, #tpu.memory_space<vmem>>, vector<128x1xf32>
      %cst_60 = arith.constant dense<0.000000e+00> : vector<1x1xf32>
      %177 = tpu.matmul %175, %176, %cst_60 {dimension_numbers = #tpu.dot_dimension_numbers<[1], [0], [0], [1], [0, 0, 1, 1], [], []>} : vector<1x128xf32>, vector<128x1xf32>, vector<1x1xf32> -> vector<1x1xf32>
      %c0_61 = arith.constant 0 : index
      %c0_62 = arith.constant 0 : index
      %178 = vector.load %arg7[%c0_61, %c0_62] : memref<1x1xf32, #tpu.memory_space<vmem>>, vector<1x1xf32>
      %179 = arith.addf %177, %178 : vector<1x1xf32>
      %180 = arith.negf %179 : vector<1x1xf32>
      %181 = math.exp %180 : vector<1x1xf32>
      %cst_63 = arith.constant 1.000000e+00 : f32
      %182 = vector.broadcast %cst_63 : f32 to vector<1x1xf32>
      %183 = arith.addf %182, %181 : vector<1x1xf32>
      %184 = arith.divf %182, %183 : vector<1x1xf32>
      %c0_64 = arith.constant 0 : index
      %c0_65 = arith.constant 0 : index
      %185 = vector.load %arg8[%c0_64, %c0_65] : memref<1x1xf32, #tpu.memory_space<vmem>>, vector<1x1xf32>
      tpu.vector_store %arg8[%c0_64, %c0_65], %184 {strides = array<i32>} : memref<1x1xf32, #tpu.memory_space<vmem>>, vector<1x1xf32>,
    } else {
    }
    return
  }
  func.func @transform_0(%arg0: i32, %arg1: i32) -> (i32, i32, i32) {
    %c0_i32 = arith.constant 0 : i32
    %c0_i32_0 = arith.constant 0 : i32
    return %arg1, %arg0, %c0_i32 : i32, i32, i32
  }
  func.func @transform_1(%arg0: i32, %arg1: i32) -> (i32, i32) {
    %c0_i32 = arith.constant 0 : i32
    %c0_i32_0 = arith.constant 0 : i32
    %c0_i32_1 = arith.constant 0 : i32
    return %c0_i32, %c0_i32_0 : i32, i32
  }
  func.func @transform_2(%arg0: i32, %arg1: i32) -> (i32, i32) {
    %c0_i32 = arith.constant 0 : i32
    %c0_i32_0 = arith.constant 0 : i32
    %c0_i32_1 = arith.constant 0 : i32
    return %c0_i32, %c0_i32_0 : i32, i32
  }
  func.func @transform_3(%arg0: i32, %arg1: i32) -> (i32, i32) {
    %c0_i32 = arith.constant 0 : i32
    %c0_i32_0 = arith.constant 0 : i32
    %c0_i32_1 = arith.constant 0 : i32
    return %c0_i32, %c0_i32_0 : i32, i32
  }
  func.func @transform_4(%arg0: i32, %arg1: i32) -> (i32, i32) {
    %c0_i32 = arith.constant 0 : i32
    %c0_i32_0 = arith.constant 0 : i32
    %c0_i32_1 = arith.constant 0 : i32
    return %c0_i32, %c0_i32_0 : i32, i32
  }
  func.func @transform_5(%arg0: i32, %arg1: i32) -> (i32, i32) {
    %c0_i32 = arith.constant 0 : i32
    %c0_i32_0 = arith.constant 0 : i32
    %c0_i32_1 = arith.constant 0 : i32
    return %c0_i32, %c0_i32_0 : i32, i32
  }
  func.func @transform_6(%arg0: i32, %arg1: i32) -> (i32, i32) {
    %c0_i32 = arith.constant 0 : i32
    %c0_i32_0 = arith.constant 0 : i32
    return %arg0, %c0_i32 : i32, i32
  }
}

</mosaic_0001>

<bundles_post_ra>
// kernel: tpu_custom_call.1
= control target key start
LH: loop header
LB: loop body
LE: loop exit
PB: predicated region body
PF: predicated region fallthrough
CT: control target
= control target key end

     0   :  { %s3179_s0 = inlined_call_operand.vmem [shape: s32[8,1,1], index: 0, kind: input, shape index: {}]   ;;  %s3180_s1 = inlined_call_operand.vmem [shape: f32[24,384], index: 1, kind: input, shape index: {}]   ;;  %s3181_s2 = inlined_call_operand.hbm [shape: f32[128,384], index: 2, kind: input, shape index: {}]   ;;  %s3182_s3 = inlined_call_operand.vmem [shape: f32[1,128], index: 3, kind: input, shape index: {}]   ;;  %s3183_s4 = inlined_call_operand.vmem [shape: f32[128,1], index: 4, kind: input, shape index: {}]   ;;  %s3184_s5 = inlined_call_operand.<no memory space> [shape: f32[1,1], index: 5, kind: input, shape index: {}]   ;;  %s3185_s6 = inlined_call_operand.hbm [shape: f32[1,1], index: 6, kind: output, shape index: {}]  }
   0x1   :  { %v11_v0 = vstv %s3184_s5 }
   0x2   :  { %12 = vst [vmem:[#allocation3] sm:$0x1] %v11_v0 }
   0x3   :  { %13 = vsyncpa [#allocation5], 0 }
   0x4   :  { %14 = vsyncpa [#allocation6], 0  ;;  %s2688_s23 = smov 0   ;;  %s2690_s24 = smov 0  }
   0x5   :  { %s2692_s25 = smov 0  }
   0x6 LB: > { %s1820_s5 = sadd.s32 4294967295, %s2636_s25   ;;  %s29_s26 = sadd.s32 1, %s2632_s24  ;;  %s2636_s25 = sphi %s2692_s25, %s20_s25   ;;  %s2632_s24 = sphi %s2690_s24, %s3196_s24   ;;  %s2628_s23 = sphi %s2688_s23, %s3195_s23  }
   0x7   : > { %p30_p0 = scmp.ge.s32.totalorder %s29_s26, 2  ;;  %p1821_p1 = scmp.ge.s32.totalorder %s2636_s25, 1 }
   0x8   : > { %p196_p2 = scmp.lt.s32.totalorder %s2636_s25, 3  ;;  %p2715_p4 = scmp.eq.s32.totalorder %s1820_s5, 0 }
   0x9   : > { %s3198_s26 = smov (%p30_p0, %s29_s26), 0  ;;  %s2638_s29 = smov [#allocation4]  }
   0xa   : > { %p2709_p3 = pnand %p1821_p1, %p196_p2  ;;  %s211_s30 = sshll.u32 %s2638_s29, 4  ;;  %s212_s30 = int_to_ptr.vmem [resolvable:$true] %s211_s30 }
   0xb   : > { %s3190_s28 = scalar_select %p2715_p4, 1, 0 }
   0xc   : > { %s3189_s27 = scalar_select %p2709_p3, 1, 0 }
   0xd   : > { %p2462_p5 = pneg %p2709_p3  ;;  %s2552_s10 = scalar_lea.hbm %s3181_s2, 6144 }
   0xe   : > { %p2553_p7 = scmp.ne.s32.totalorder %s3181_s2, %s2552_s10  ;;  %p2559_p11 = scmp.lt.u32.totalorder %s2552_s10, %s3181_s2 }
   0xf   : > { %p2723_p6 = pnand %p2715_p4, %p2462_p5 }
  0x11   : > { %p2554_p8 = pneg %p2723_p6 }
  0x13   : > { %p2555_p9 = pnand %p2554_p8, %p2553_p7 }
  0x15   : > { %p2556_p10 = pneg %p2555_p9 }
  0x17   : > { %p2561_p12 = pnand %p2559_p11, %p2556_p10 }
  0x19   : > { %2564 = shalt.err (!%p2561_p12)
}
  0x1a   : > { %s2565_s15 = scalar_lea.vmem %s212_s30, 6144  ;;  %p2573_p2 = scmp.lt.s32.totalorder %s212_s30, %s212_s30 }
  0x1b   : > { %p2566_p13 = scmp.ne.s32.totalorder %s212_s30, %s2565_s15  ;;  %p2574_p5 = scmp.lt.s32.totalorder %s2565_s15, %s2565_s15 }
  0x1d   : > { %p2568_p0 = pnand %p2566_p13, %p2554_p8  ;;  %p2575_p4 = por %p2574_p5, %p2573_p2 }
  0x1f   : > { %p2569_p1 = pneg %p2568_p0 }
  0x21   : > { %p2576_p3 = pnand %p2575_p4, %p2569_p1 }
  0x23   : > { %2579 = shalt.err (!%p2576_p3)
}
  0x24   : > { %s2639_s16 = smov 384   ;;  %s2640_s17 = smov 24  }
  0x25   : > { %2465 = dma.hbm_to_vmem [thread:$0]  (!%p2723_p6), %s3181_s2, 6144, %s212_s30, [#allocation5], %s2639_s16, %s2639_s16, %s2640_s17  }
  0x26   : > { %p3192_p7 = scmp.ne.s32.totalorder %s3189_s27, 0 }
  0x27   : > { %p3193_p9 = scmp.ne.s32.totalorder (!%p3192_p7), %s3190_s28, 0 }
  0x28   : > { %247 = sbr.rel (%p3192_p7) target bundleno = 1529 (0x5f9), region = 44 }
  0x2f   : > { %2619 = dma.done.wait (%p3193_p9), [#allocation5], 6144  }
  0x30   : > { %2621 = vsyncadd (%p3193_p9), [#allocation5], 4294961152  ;;  %s2750_s20 = sshll.u32 %s2628_s23, 2  ;;  %p1827_p4 = scmp.ne.s32.totalorder %s2628_s23, 0 }
  0x31   : > { %p275_p3 = scmp.lt.s32.totalorder %s2750_s20, 7  ;;  %v2641_v1 = vmov (!%p1827_p4), 0.0  }
  0x32   : > { %285 = sbr.rel (%p1827_p4) target bundleno = 57 (0x39), region = 52  ;;  %286 = vst [vmem:[#allocation2] sm:$0x1] (!%p1827_p4), %v2641_v1 }
  0x33   : > { %s276_s21 = scalar_select %p275_p3, %s2750_s20, 7 }
  0x35   : > { %s2757_s30 = scalar_lea.vmem %s3179_s0, %s276_s21 }
  0x39 PF: > { %v292_v2 = vld [vmem:[%s2757_s30] sm:$0x1]  ;;  %v304_v3 = vld [vmem:[%s3180_s1 + $0x8] sm:$0xff]  ;;  %v2642_v4 = vmov 0   ;;  %v306_v7 = vld [vmem:[%s3180_s1 + $0x18] sm:$0xff]  ;;  %v2643_v9 = vmov 0.0|0.0   ;;  %v288_v22 = vlaneseq }
  0x3a   : > { %2506 = vset.pattern.permute.xlu0 %v2642_v4  ;;  %v307_v5 = vld [vmem:[%s3180_s1 + $0x20] sm:$0xff]  ;;  %2507 = vset.pattern.permute.xlu1 %v2642_v4  ;;  %v305_v11 = vld [vmem:[%s3180_s1 + $0x10] sm:$0xff]  ;;  %v308_v12 = vld [vmem:[%s3180_s1 + $0x28] sm:$0xff]  ;;  %v2644_v17 = vmov 0.0   ;;  %vm2645_vm0 = vmmov 0   ;;  %vm312_vm1 = vcmask 195584  }
  0x3b   : > { %v303_v6 = vld [vmem:[%s3180_s1] sm:$0xff]  ;;  %294 = vperm.xlu0 %2506, %v292_v2   ;;  %v2773_v8 = vpack.c.bf16 %v307_v5, %v304_v3  ;;  %2174 = vmatprep.subr.bf16.mxu1 %v2643_v9  ;;  %v2785_v14 = vpack.c.bf16 %v308_v12, %v305_v11  ;;  %v2790_v15 = vld [vmem:[%s3180_s1 + $0x38] sm:$0xff]  ;;  %v458_v16 = vld [vmem:[#allocation4 + $0x8] sm:$0xff]  ;;  %v297_v23 = vshrl.u32 %v288_v22, 7  ;;  %v2818_v26 = vand.u32 127, %v288_v22  ;;  %p668_p6 = scmp.lt.s32.totalorder %s2750_s20, 5 }
  0x3c   : > { %v2776_v10 = vpack.c.bf16 %v306_v7, %v303_v6  ;;  %v1834_v13 = vld [vmem:[%s2757_s30 + $0x1] sm:$0x1]  ;;  %380 = vmatprep.mubr.f32.mxu0 %v2644_v17  ;;  %v461_v18 = vld [vmem:[#allocation4 + $0x20] sm:$0xff]  ;;  %v2800_v19 = vld [vmem:[%s3180_s1 + $0x30] sm:$0xff]  ;;  %1965 = vmatprep.mubr.msk.f32.mxu1 %vm2645_vm0, %v2644_v17  ;;  %s992_s7 = sadd.s32 1, %s2750_s20  ;;  %s1317_s9 = sadd.s32 2, %s2750_s20 }
  0x3d   : > { %2171 = vmatprep.subr.bf16.mxu0 %v2773_v8  ;;  %2176 = vmatpush3.bf16.msra.mxu1 %v2785_v14  ;;  %v2805_v20 = vld [vmem:[%s3180_s1 + $0x40] sm:$0xff]  ;;  %v2807_v21 = vpack.c.bf16 %v461_v18, %v458_v16  ;;  %v2816_v24 = vsub.s32 0, %v297_v23  ;;  %v459_v28 = vld [vmem:[#allocation4 + $0x10] sm:$0xff]  ;;  %v462_v29 = vld [vmem:[#allocation4 + $0x28] sm:$0xff]  ;;  %s669_s28 = scalar_select %p668_p6, 1, 0 }
  0x3e   : > { %2173 = vmatpush1.bf16.msra.mxu0 %v2776_v10  ;;  %1963 = vmatprep.subr.mxu1 %v2644_v17  ;;  %v457_v25 = vld [vmem:[#allocation4] sm:$0xff]  ;;  %v460_v27 = vld [vmem:[#allocation4 + $0x18] sm:$0xff]  ;;  %v467_v32 = vld [vmem:[#allocation4 + $0x50] sm:$0xff]  ;;  %v2823_v35 = vpack.c.bf16 %v462_v29, %v459_v28  ;;  %p993_p8 = scmp.lt.s32.totalorder %s992_s7, 5  ;;  %p1318_p10 = scmp.lt.s32.totalorder %s1317_s9, 5 }
  0x3f   : > { %676 = vperm.xlu0 %2506, %v1834_v13   ;;  %320 = vmatprep.subr.mxu0 %v2790_v15  ;;  %v464_v31 = vld [vmem:[#allocation4 + $0x38] sm:$0xff]  ;;  %v2821_v34 = vpack.c.bf16 %v460_v27, %v457_v25  ;;  %v463_v36 = vld [vmem:[#allocation4 + $0x30] sm:$0xff]  ;;  %v466_v38 = vld [vmem:[#allocation4 + $0x48] sm:$0xff]  ;;  %s1642_s11 = sadd.s32 3, %s2750_s20  ;;  %p1852_p12 = scmp.ne.s32.totalorder %s2628_s23, 1 }
  0x40   : > { %v2826_v37 = vpack.c.bf16 %v467_v32, %v464_v31  ;;  %v465_v39 = vld [vmem:[#allocation4 + $0x40] sm:$0xff]  ;;  %v468_v40 = vld [vmem:[#allocation4 + $0x58] sm:$0xff]  ;;  %v470_v42 = vld [vmem:[#allocation4 + $0x68] sm:$0xff]  ;;  %v2833_v44 = vpack.c.bf16 %v466_v38, %v463_v36  ;;  %s994_s8 = scalar_select %p993_p8, 1, 0 }
  0x41   : > { %1964 = vmatpush3.msra.mxu1 %v2805_v20  ;;  %v473_v43 = vld [vmem:[#allocation4 + $0x80] sm:$0xff]  ;;  %v2835_v45 = vpack.c.bf16 %v468_v40, %v465_v39  ;;  %v472_v48 = vld [vmem:[#allocation4 + $0x78] sm:$0xff]  ;;  %v471_v49 = vld [vmem:[#allocation4 + $0x70] sm:$0xff]  ;;  %s1319_s10 = scalar_select %p1318_p10, 1, 0 }
  0x42   : > { %321 = vmatpush1.msra.mxu0 %v2800_v19  ;;  %2209 = vmatprep.subr.bf16.mxu1 %v2643_v9  ;;  %v469_v46 = vld [vmem:[#allocation4 + $0x60] sm:$0xff]  ;;  %v2839_v47 = vpack.c.bf16 %v473_v43, %v470_v42  ;;  %v474_v50 = vld [vmem:[#allocation4 + $0x88] sm:$0xff]  ;;  %v476_v51 = vld [vmem:[#allocation4 + $0x98] sm:$0xff]  ;;  %p1643_p11 = scmp.lt.s32.totalorder %s1642_s11, 5  ;;  %vm2647_vm10 = vmmov (!%p1852_p12), 0   ;;  %vm1747_vm11 = vcmask (!%p1852_p12), 0  }
  0x43   : > { %2178 = vmatprep.subr.bf16.mxu0 %v2807_v21  ;;  %v479_v52 = vld [vmem:[#allocation4 + $0xb0] sm:$0xff]  ;;  %v2846_v53 = vpack.c.bf16 %v472_v48, %v469_v46  ;;  %v2848_v54 = vpack.c.bf16 %v474_v50, %v471_v49  ;;  %v478_v57 = vld [vmem:[#allocation4 + $0xa8] sm:$0xff]  ;;  %v477_v58 = vld [vmem:[#allocation4 + $0xa0] sm:$0xff] }
  0x44   : > { %v475_v55 = vld [vmem:[#allocation4 + $0x90] sm:$0xff]  ;;  %v2852_v56 = vpack.c.bf16 %v479_v52, %v476_v51  ;;  %v480_v59 = vld [vmem:[#allocation4 + $0xb8] sm:$0xff]  ;;  %v482_v60 = vld [vmem:[#allocation4 + $0xc8] sm:$0xff]  ;;  %s1644_s12 = scalar_select %p1643_p11, 1, 0 }
  0x45   : > { %v485_v61 = vld [vmem:[#allocation4 + $0xe0] sm:$0xff]  ;;  %v2856_v62 = vpack.c.bf16 %v478_v57, %v475_v55  ;;  %v2858_v63 = vpack.c.bf16 %v480_v59, %v477_v58  ;;  %v484_v2 = vld [vmem:[#allocation4 + $0xd8] sm:$0xff]  ;;  %v483_v3 = vld [vmem:[#allocation4 + $0xd0] sm:$0xff] }
  0x46   : > { %v481_v0 = vld [vmem:[#allocation4 + $0xc0] sm:$0xff]  ;;  %v2862_v1 = vpack.c.bf16 %v485_v61, %v482_v60  ;;  %v486_v4 = vld [vmem:[#allocation4 + $0xe8] sm:$0xff]  ;;  %v488_v5 = vld [vmem:[#allocation4 + $0xf8] sm:$0xff] }
  0x47   : > { %v491_v6 = vld [vmem:[#allocation4 + $0x110] sm:$0xff]  ;;  %v2866_v7 = vpack.c.bf16 %v484_v2, %v481_v0  ;;  %v2868_v11 = vpack.c.bf16 %v486_v4, %v483_v3  ;;  %v490_v16 = vld [vmem:[#allocation4 + $0x108] sm:$0xff]  ;;  %v489_v18 = vld [vmem:[#allocation4 + $0x100] sm:$0xff] }
  0x48   : > { %v487_v12 = vld [vmem:[#allocation4 + $0xf0] sm:$0xff]  ;;  %v2872_v13 = vpack.c.bf16 %v491_v6, %v488_v5  ;;  %v492_v22 = vld [vmem:[#allocation4 + $0x118] sm:$0xff]  ;;  %v494_v23 = vld [vmem:[#allocation4 + $0x128] sm:$0xff] }
  0x49   : > { %v497_v25 = vld [vmem:[#allocation4 + $0x140] sm:$0xff]  ;;  %v2876_v27 = vpack.c.bf16 %v490_v16, %v487_v12  ;;  %v2878_v28 = vpack.c.bf16 %v492_v22, %v489_v18  ;;  %v496_v31 = vld [vmem:[#allocation4 + $0x138] sm:$0xff]  ;;  %v495_v32 = vld [vmem:[#allocation4 + $0x130] sm:$0xff] }
  0x4a   : > { %v493_v29 = vld [vmem:[#allocation4 + $0x120] sm:$0xff]  ;;  %v500_v36 = vld [vmem:[#allocation4 + $0x158] sm:$0xff]  ;;  %v503_v38 = vld [vmem:[#allocation4 + $0x170] sm:$0xff] }
  0x4b   : > { %v2886_v39 = vpack.c.bf16 %v496_v31, %v493_v29  ;;  %v2892_v42 = vpack.c.bf16 %v503_v38, %v500_v36  ;;  %v502_v43 = vld [vmem:[#allocation4 + $0x168] sm:$0xff]  ;;  %v501_v46 = vld [vmem:[#allocation4 + $0x160] sm:$0xff]  ;;  %v504_v48 = vld [vmem:[#allocation4 + $0x178] sm:$0xff] }
  0x4c   : > { %v2898_v50 = vpack.c.bf16 %v504_v48, %v501_v46  ;;  %v2904_v52 = vld [vmem:[#allocation2] sm:$0x1]  ;;  %v1840_v58 = vld [vmem:[%s2757_s30 + $0x2] sm:$0x1]  ;;  %v1846_v59 = vld [vmem:[%s2757_s30 + $0x3] sm:$0x1] }
  0x4d   : > { %1001 = vperm.xlu1 %2507, %v1840_v58  }
  0x51   : > { %1326 = vperm.xlu1 %2507, %v1846_v59  }
  0xba   : > { %v295_v30 = vpop.permute.xlu0 %294 }
  0xbb   : > { %v299_v33 = vrot.slane %v295_v30, %v2816_v24  ;;  %v2882_v30 = vpack.c.bf16 %v497_v25, %v494_v23  ;;  %v2968_v25 = vld [vmem:[%s3182_s3] sm:$0x1] }
  0xbd   : > { %vm300_vm2 = vcmp.eq.s32.totalorder %v299_v33, %v2818_v26  ;;  %v498_v33 = vld [vmem:[#allocation4 + $0x148] sm:$0xff] }
  0xbe   : > { %v1829_v41 = vsel %vm300_vm2, 1.0, %v2644_v17  ;;  %v2888_v40 = vpack.c.bf16 %v498_v33, %v495_v32  ;;  %v677_v51 = vpop.permute.xlu0 %676 }
  0xbf   : > { %1830 = vmatmul.mubr.msk.f32.vlgmr.msra.gmra.mrb[0].mxu0 %vm312_vm1, %v1829_v41  ;;  %1966 = vmatmul.mubr.msk.f32.vlgmr.msra.gmra.mrb[0].mxu1 %vm312_vm1, %v1829_v41  ;;  %v499_v41 = vld [vmem:[#allocation4 + $0x150] sm:$0xff]  ;;  %v681_v55 = vrot.slane %v677_v51, %v2816_v24 }
  0xc0   : > { %2180 = vmatpush1.bf16.msra.mxu0 %v2821_v34  ;;  %2211 = vmatpush3.bf16.msra.mxu1 %v2823_v35  ;;  %v2896_v49 = vpack.c.bf16 %v502_v43, %v499_v41  ;;  %v670_v43 = vstv %s669_s28 }
  0xc1   : > { %2182 = vmatprep.subr.bf16.mxu0 %v2826_v37  ;;  %2212 = vmatprep.subr.bf16.mxu1 %v2643_v9  ;;  %vm682_vm3 = vcmp.eq.s32.totalorder %v681_v55, %v2818_v26  ;;  %vm671_vm4 = vcmp.eq.s32.totalorder %v670_v43, 1 }
  0xc2   : > { %569 = vmatprep.mubr.f32.mxu0 %v2644_v17  ;;  %2000 = vmatprep.mubr.msk.f32.mxu1 %vm2645_vm0, %v2644_v17  ;;  %v1835_v57 = vsel %vm682_vm3, 1.0, %v2644_v17 }
  0xc4   : > { %2184 = vmatpush1.bf16.msra.mxu0 %v2833_v44  ;;  %2214 = vmatpush3.bf16.msra.mxu1 %v2835_v45 }
  0xc5   : > { %2186 = vmatprep.subr.bf16.mxu0 %v2839_v47  ;;  %2215 = vmatprep.subr.bf16.mxu1 %v2643_v9 }
  0xc8   : > { %2188 = vmatpush1.bf16.msra.mxu0 %v2846_v53  ;;  %2217 = vmatpush3.bf16.msra.mxu1 %v2848_v54 }
  0xc9   : > { %2190 = vmatprep.subr.bf16.mxu0 %v2852_v56  ;;  %2218 = vmatprep.subr.bf16.mxu1 %v2643_v9 }
  0xcc   : > { %2192 = vmatpush1.bf16.msra.mxu0 %v2856_v62  ;;  %2220 = vmatpush3.bf16.msra.mxu1 %v2858_v63 }
  0xcd   : > { %2194 = vmatprep.subr.bf16.mxu0 %v2862_v1  ;;  %2221 = vmatprep.subr.bf16.mxu1 %v2643_v9 }
  0xd0   : > { %2196 = vmatpush1.bf16.msra.mxu0 %v2866_v7  ;;  %2223 = vmatpush3.bf16.msra.mxu1 %v2868_v11 }
  0xd1   : > { %2198 = vmatprep.subr.bf16.mxu0 %v2872_v13  ;;  %2224 = vmatprep.subr.bf16.mxu1 %v2643_v9 }
  0xd4   : > { %2200 = vmatpush1.bf16.msra.mxu0 %v2876_v27  ;;  %2226 = vmatpush3.bf16.msra.mxu1 %v2878_v28 }
  0xd5   : > { %2202 = vmatprep.subr.bf16.mxu0 %v2882_v30  ;;  %2227 = vmatprep.subr.bf16.mxu1 %v2643_v9 }
  0xd8   : > { %2204 = vmatpush1.bf16.msra.mxu0 %v2886_v39  ;;  %2229 = vmatpush3.bf16.msra.mxu1 %v2888_v40 }
  0xd9   : > { %2206 = vmatprep.subr.bf16.mxu0 %v2892_v42  ;;  %2230 = vmatprep.subr.bf16.mxu1 %v2643_v9 }
  0xdc   : > { %2208 = vmatpush1.bf16.msra.mxu0 %v2896_v49  ;;  %2232 = vmatpush3.bf16.msra.mxu1 %v2898_v50 }
  0xdd   : > { %2234 = vmatprep.subr.bf16.mxu0 %v2773_v8  ;;  %2237 = vmatprep.subr.bf16.mxu1 %v2643_v9 }
  0xdf   : > { %570 = vmatmul.mubr.f32.vlgmr.msra.gmra.mrb[0].mxu0 %v2904_v52  ;;  %2001 = vmatmul.mubr.f32.vlgmr.msra.gmra.mrb[2].mxu1 %v2904_v52 }
  0xe0   : > { %2236 = vmatpush1.bf16.msra.mxu0 %v2776_v10  ;;  %2239 = vmatpush3.bf16.msra.mxu1 %v2785_v14 }
  0xe1   : > { %692 = vmatprep.subr.mxu0 %v2790_v15  ;;  %2007 = vmatprep.subr.mxu1 %v2644_v17 }
  0xe2   : > { %752 = vmatprep.mubr.f32.mxu0 %v2644_v17  ;;  %2009 = vmatprep.mubr.msk.f32.mxu1 %vm2645_vm0, %v2644_v17 }
  0xe4   : > { %693 = vmatpush1.msra.mxu0 %v2800_v19  ;;  %2008 = vmatpush3.msra.mxu1 %v2805_v20 }
  0xe5   : > { %1836 = vmatmul.mubr.msk.f32.vlgmr.msra.gmra.mrb[2].mxu0 %vm312_vm1, %v1835_v57  ;;  %2010 = vmatmul.mubr.msk.f32.vlgmr.msra.gmra.mrb[4].mxu1 %vm312_vm1, %v1835_v57 }
  0xe6   : > { %2241 = vmatprep.subr.bf16.mxu0 %v2807_v21  ;;  %2272 = vmatprep.subr.bf16.mxu1 %v2643_v9 }
  0xe7   : > { %2243 = vmatpush1.bf16.msra.mxu0 %v2821_v34  ;;  %2274 = vmatpush3.bf16.msra.mxu1 %v2823_v35 }
  0xe8   : > { %2245 = vmatprep.subr.bf16.mxu0 %v2826_v37  ;;  %2275 = vmatprep.subr.bf16.mxu1 %v2643_v9 }
  0xe9   : > { %893 = vmatprep.mubr.f32.mxu0 %v2644_v17  ;;  %2044 = vmatprep.mubr.msk.f32.mxu1 %vm2645_vm0, %v2644_v17 }
  0xeb   : > { %2247 = vmatpush1.bf16.msra.mxu0 %v2833_v44  ;;  %2277 = vmatpush3.bf16.msra.mxu1 %v2835_v45 }
  0xec   : > { %2249 = vmatprep.subr.bf16.mxu0 %v2839_v47  ;;  %2278 = vmatprep.subr.bf16.mxu1 %v2643_v9 }
  0xef   : > { %2251 = vmatpush1.bf16.msra.mxu0 %v2846_v53  ;;  %2280 = vmatpush3.bf16.msra.mxu1 %v2848_v54 }
  0xf0   : > { %2253 = vmatprep.subr.bf16.mxu0 %v2852_v56  ;;  %2281 = vmatprep.subr.bf16.mxu1 %v2643_v9 }
  0xf3   : > { %2255 = vmatpush1.bf16.msra.mxu0 %v2856_v62  ;;  %2283 = vmatpush3.bf16.msra.mxu1 %v2858_v63 }
  0xf4   : > { %2257 = vmatprep.subr.bf16.mxu0 %v2862_v1  ;;  %2284 = vmatprep.subr.bf16.mxu1 %v2643_v9 }
  0xf7   : > { %2259 = vmatpush1.bf16.msra.mxu0 %v2866_v7  ;;  %2286 = vmatpush3.bf16.msra.mxu1 %v2868_v11 }
  0xf8   : > { %2261 = vmatprep.subr.bf16.mxu0 %v2872_v13  ;;  %2287 = vmatprep.subr.bf16.mxu1 %v2643_v9 }
  0xfb   : > { %2263 = vmatpush1.bf16.msra.mxu0 %v2876_v27  ;;  %2289 = vmatpush3.bf16.msra.mxu1 %v2878_v28 }
  0xfc   : > { %2265 = vmatprep.subr.bf16.mxu0 %v2882_v30  ;;  %2290 = vmatprep.subr.bf16.mxu1 %v2643_v9 }
  0xff   : > { %2267 = vmatpush1.bf16.msra.mxu0 %v2886_v39  ;;  %2292 = vmatpush3.bf16.msra.mxu1 %v2888_v40 }
 0x100   : > { %2269 = vmatprep.subr.bf16.mxu0 %v2892_v42  ;;  %2293 = vmatprep.subr.bf16.mxu1 %v2643_v9 }
 0x103   : > { %2271 = vmatpush1.bf16.msra.mxu0 %v2896_v49  ;;  %2295 = vmatpush3.bf16.msra.mxu1 %v2898_v50 }
 0x104   : > { %2297 = vmatprep.subr.bf16.mxu0 %v2773_v8  ;;  %2300 = vmatprep.subr.bf16.mxu1 %v2643_v9 }
 0x192   : > { %v453_v60 = vpop.f32.mrb[0].mxu1 }
 0x193   : > { %v1967_v61 = vpop.f32.mrb[1].mxu1 }
 0x1b2   : > { %v571_v0 = vpop.f32.mrb[0].mxu0  ;;  %v642_v2 = vpop.f32.mrb[2].mxu1 }
 0x1b3   : > { %v1832_v3 = vmul.f32 -1.442695, %v571_v0  ;;  %v573_v4 = vpop.f32.mrb[1].mxu0  ;;  %v2002_v5 = vpop.f32.mrb[3].mxu1  ;;  %v660_v31 = vadd.f32 %v642_v2, %v2968_v25 }
 0x1b4   : > { %v1833_v6 = vmul.f32 -1.442695, %v573_v4 }
 0x1b5   : > { %2508 = vpow2.f32 %v1832_v3 }
 0x1b6   : > { %2510 = vpow2.f32 %v1833_v6 }
 0x1b8   : > { %v2963_v12 = vpop.f32.mrb[4].mxu1 }
 0x1b9   : > { %v2011_v16 = vpop.f32.mrb[5].mxu1 }
 0x1bf   : > { %v2509_v18 = vpop.eup %2508 }
 0x1c0   : > { %v650_v22 = vadd.f32 1.0, %v2509_v18  ;;  %v2511_v23 = vpop.eup %2510 }
 0x1c1   : > { %v657_v29 = vadd.f32 1.0, %v2511_v23 }
 0x1c2   : > { %2512 = vrcp.f32 %v650_v22 }
 0x1c3   : > { %2514 = vrcp.f32 %v657_v29 }
 0x1cc   : > { %v2513_v32 = vpop.eup %2512 }
 0x1cd   : > { %v661_v33 = vmul.f32 %v2513_v32, %v660_v31  ;;  %v2515_v38 = vpop.eup %2514 }
 0x1ce   : > { %v664_v41 = vsub.f32 1.0, %v2515_v38  ;;  %v666_v51 = vmul.f32 %v2515_v38, %v2904_v52 }
 0x1cf   : > { %v662_v36 = vadd.f32 %v661_v33, %v453_v60  ;;  %v995_v33 = vstv %s994_s8 }
 0x1d0   : > { %vm996_vm6 = vcmp.eq.s32.totalorder %v995_v33, 1 }
 0x1d1   : > { %2516 = vtanh.f32 %v662_v36 }
 0x1db   : > { %v2517_v46 = vpop.eup %2516 }
 0x1dc   : > { %v665_v48 = vmul.f32 %v2517_v46, %v664_v41 }
 0x1de   : > { %v667_v55 = vadd.f32 %v666_v51, %v665_v48 }
 0x1e0   : > { %v2974_v57 = vsel %vm671_vm4, %v667_v55, %v2904_v52  ;;  %v1002_v52 = vpop.permute.xlu1 %1001 }
 0x1e1   : > { %894 = vmatmul.mubr.f32.vlgmr.msra.gmra.mrb[2].mxu0 %v2974_v57  ;;  %2045 = vmatmul.mubr.f32.vlgmr.msra.gmra.mrb[6].mxu1 %v2974_v57  ;;  %v1006_v58 = vrot.slane %v1002_v52, %v2816_v24 }
 0x1e2   : > { %2299 = vmatpush1.bf16.msra.mxu0 %v2776_v10  ;;  %2302 = vmatpush3.bf16.msra.mxu1 %v2785_v14 }
 0x1e3   : > { %1017 = vmatprep.subr.mxu0 %v2790_v15  ;;  %2051 = vmatprep.subr.mxu1 %v2644_v17  ;;  %vm1007_vm5 = vcmp.eq.s32.totalorder %v1006_v58, %v2818_v26 }
 0x1e4   : > { %1077 = vmatprep.mubr.f32.mxu0 %v2644_v17  ;;  %2053 = vmatprep.mubr.msk.f32.mxu1 %vm2645_vm0, %v2644_v17  ;;  %v1841_v59 = vsel %vm1007_vm5, 1.0, %v2644_v17  ;;  %v1327_v38 = vpop.permute.xlu1 %1326 }
 0x1e5   : > { %v1331_v48 = vrot.slane %v1327_v38, %v2816_v24  ;;  %v1659_v38 = vld [vmem:[%s3183_s4 + $0x28] sm:$0xff] (!%p1852_p12) }
 0x1e6   : > { %1018 = vmatpush1.msra.mxu0 %v2800_v19  ;;  %2052 = vmatpush3.msra.mxu1 %v2805_v20 }
 0x1e7   : > { %2304 = vmatprep.subr.bf16.mxu0 %v2807_v21  ;;  %2335 = vmatprep.subr.bf16.mxu1 %v2643_v9  ;;  %vm1332_vm7 = vcmp.eq.s32.totalorder %v1331_v48, %v2818_v26 }
 0x1e8   : > { %1842 = vmatmul.mubr.msk.f32.vlgmr.msra.gmra.mrb[4].mxu0 %vm312_vm1, %v1841_v59  ;;  %2054 = vmatmul.mubr.msk.f32.vlgmr.msra.gmra.mrb[8].mxu1 %vm312_vm1, %v1841_v59  ;;  %v1847_v24 = vsel %vm1332_vm7, 1.0, %v2644_v17 }
 0x1e9   : > { %2306 = vmatpush1.bf16.msra.mxu0 %v2821_v34  ;;  %2337 = vmatpush3.bf16.msra.mxu1 %v2823_v35 }
 0x1ea   : > { %2308 = vmatprep.subr.bf16.mxu0 %v2826_v37  ;;  %2338 = vmatprep.subr.bf16.mxu1 %v2643_v9 }
 0x1eb   : > { %1218 = vmatprep.mubr.f32.mxu0 %v2644_v17  ;;  %2088 = vmatprep.mubr.msk.f32.mxu1 %vm2645_vm0, %v2644_v17 }
 0x1ed   : > { %2310 = vmatpush1.bf16.msra.mxu0 %v2833_v44  ;;  %2340 = vmatpush3.bf16.msra.mxu1 %v2835_v45 }
 0x1ee   : > { %2312 = vmatprep.subr.bf16.mxu0 %v2839_v47  ;;  %2341 = vmatprep.subr.bf16.mxu1 %v2643_v9 }
 0x1f1   : > { %2314 = vmatpush1.bf16.msra.mxu0 %v2846_v53  ;;  %2343 = vmatpush3.bf16.msra.mxu1 %v2848_v54 }
 0x1f2   : > { %2316 = vmatprep.subr.bf16.mxu0 %v2852_v56  ;;  %2344 = vmatprep.subr.bf16.mxu1 %v2643_v9 }
 0x1f5   : > { %2318 = vmatpush1.bf16.msra.mxu0 %v2856_v62  ;;  %2346 = vmatpush3.bf16.msra.mxu1 %v2858_v63 }
 0x1f6   : > { %2320 = vmatprep.subr.bf16.mxu0 %v2862_v1  ;;  %2347 = vmatprep.subr.bf16.mxu1 %v2643_v9 }
 0x1f9   : > { %2322 = vmatpush1.bf16.msra.mxu0 %v2866_v7  ;;  %2349 = vmatpush3.bf16.msra.mxu1 %v2868_v11 }
 0x1fa   : > { %2324 = vmatprep.subr.bf16.mxu0 %v2872_v13  ;;  %2350 = vmatprep.subr.bf16.mxu1 %v2643_v9 }
 0x1fd   : > { %2326 = vmatpush1.bf16.msra.mxu0 %v2876_v27  ;;  %2352 = vmatpush3.bf16.msra.mxu1 %v2878_v28 }
 0x1fe   : > { %2328 = vmatprep.subr.bf16.mxu0 %v2882_v30  ;;  %2353 = vmatprep.subr.bf16.mxu1 %v2643_v9 }
 0x201   : > { %2330 = vmatpush1.bf16.msra.mxu0 %v2886_v39  ;;  %2355 = vmatpush3.bf16.msra.mxu1 %v2888_v40 }
 0x202   : > { %2332 = vmatprep.subr.bf16.mxu0 %v2892_v42  ;;  %2356 = vmatprep.subr.bf16.mxu1 %v2643_v9 }
 0x205   : > { %2334 = vmatpush1.bf16.msra.mxu0 %v2896_v49  ;;  %2358 = vmatpush3.bf16.msra.mxu1 %v2898_v50 }
 0x206   : > { %2360 = vmatprep.subr.bf16.mxu0 %v2773_v8  ;;  %2363 = vmatprep.subr.bf16.mxu1 %v2643_v9 }
 0x2b4   : > { %v895_v60 = vpop.f32.mrb[2].mxu0  ;;  %v966_v61 = vpop.f32.mrb[6].mxu1 }
 0x2b5   : > { %v1838_v0 = vmul.f32 -1.442695, %v895_v60  ;;  %v897_v2 = vpop.f32.mrb[3].mxu0  ;;  %v2046_v3 = vpop.f32.mrb[7].mxu1  ;;  %v984_v22 = vadd.f32 %v966_v61, %v2968_v25 }
 0x2b6   : > { %v1839_v4 = vmul.f32 -1.442695, %v897_v2  ;;  %v1645_v3 = vstv %s1644_s12 }
 0x2b7   : > { %2518 = vpow2.f32 %v1838_v0  ;;  %vm1646_vm9 = vcmp.eq.s32.totalorder %v1645_v3, 1 }
 0x2b8   : > { %2520 = vpow2.f32 %v1839_v4 }
 0x2c1   : > { %v2519_v5 = vpop.eup %2518 }
 0x2c2   : > { %v974_v6 = vadd.f32 1.0, %v2519_v5  ;;  %v2521_v16 = vpop.eup %2520 }
 0x2c3   : > { %v981_v18 = vadd.f32 1.0, %v2521_v16 }
 0x2c4   : > { %2522 = vrcp.f32 %v974_v6 }
 0x2c5   : > { %2524 = vrcp.f32 %v981_v18 }
 0x2ce   : > { %v2523_v23 = vpop.eup %2522 }
 0x2cf   : > { %v985_v8 = vmul.f32 %v2523_v23, %v984_v22  ;;  %v2525_v31 = vpop.eup %2524  ;;  %v1655_v22 = vld [vmem:[%s3183_s4 + $0x8] sm:$0xff] (!%p1852_p12)  ;;  %v1656_v23 = vld [vmem:[%s3183_s4 + $0x10] sm:$0xff] (!%p1852_p12) }
 0x2d0   : > { %v988_v32 = vsub.f32 1.0, %v2525_v31  ;;  %v990_v43 = vmul.f32 %v2525_v31, %v2974_v57  ;;  %v1657_v31 = vld [vmem:[%s3183_s4 + $0x18] sm:$0xff] (!%p1852_p12) }
 0x2d1   : > { %v986_v29 = vadd.f32 %v985_v8, %v2963_v12  ;;  %v2646_v8 = vmov (!%p1852_p12), 0.0|0.0   ;;  %v2426_v33 = vpack.c.bf16 (!%p1852_p12), %v1657_v31, %v1656_v23 }
 0x2d3   : > { %2526 = vtanh.f32 %v986_v29 }
 0x2dd   : > { %v2527_v36 = vpop.eup %2526 }
 0x2de   : > { %v989_v41 = vmul.f32 %v2527_v36, %v988_v32  ;;  %v2648_v32 = vmov (!%p1852_p12), 0.0   ;;  %v1658_v36 = vld [vmem:[%s3183_s4 + $0x20] sm:$0xff] (!%p1852_p12) }
 0x2e0   : > { %v991_v46 = vadd.f32 %v990_v43, %v989_v41  ;;  %v2429_v41 = vpack.c.bf16 (!%p1852_p12), %v1659_v38, %v1658_v36  ;;  %v1660_v43 = vld [vmem:[%s3183_s4 + $0x30] sm:$0xff] (!%p1852_p12) }
 0x2e2   : > { %v3035_v51 = vsel %vm996_vm6, %v991_v46, %v2974_v57  ;;  %v1661_v46 = vld [vmem:[%s3183_s4 + $0x38] sm:$0xff] (!%p1852_p12) }
 0x2e3   : > { %1219 = vmatmul.mubr.f32.vlgmr.msra.gmra.mrb[4].mxu0 %v3035_v51  ;;  %2089 = vmatmul.mubr.f32.vlgmr.msra.gmra.mrb[10].mxu1 %v3035_v51  ;;  %v2432_v48 = vpack.c.bf16 (!%p1852_p12), %v1661_v46, %v1660_v43 }
 0x2e4   : > { %2362 = vmatpush1.bf16.msra.mxu0 %v2776_v10  ;;  %2365 = vmatpush3.bf16.msra.mxu1 %v2785_v14  ;;  %v1150_v10 = vpop.f32.mrb[8].mxu1 }
 0x2e5   : > { %1342 = vmatprep.subr.mxu0 %v2790_v15  ;;  %2095 = vmatprep.subr.mxu1 %v2644_v17  ;;  %v2055_v14 = vpop.f32.mrb[9].mxu1 }
 0x2e6   : > { %1402 = vmatprep.mubr.f32.mxu0 %v2644_v17  ;;  %2097 = vmatprep.mubr.msk.f32.mxu1 %vm2645_vm0, %v2644_v17  ;;  %v1664_v14 = vld [vmem:[%s3183_s4 + $0x50] sm:$0xff] (!%p1852_p12) }
 0x2e8   : > { %1343 = vmatpush1.msra.mxu0 %v2800_v19  ;;  %2096 = vmatpush3.msra.mxu1 %v2805_v20 }
 0x2e9   : > { %1848 = vmatmul.mubr.msk.f32.vlgmr.msra.gmra.mrb[6].mxu0 %vm312_vm1, %v1847_v24  ;;  %2098 = vmatmul.mubr.msk.f32.vlgmr.msra.gmra.mrb[12].mxu1 %vm312_vm1, %v1847_v24  ;;  %v1663_v24 = vld [vmem:[%s3183_s4 + $0x48] sm:$0xff] (!%p1852_p12) }
 0x2ea   : > { %2367 = vmatprep.subr.bf16.mxu0 %v2807_v21  ;;  %2398 = vmatprep.subr.bf16.mxu1 %v2643_v9 }
 0x2eb   : > { %2369 = vmatpush1.bf16.msra.mxu0 %v2821_v34  ;;  %2400 = vmatpush3.bf16.msra.mxu1 %v2823_v35 }
 0x2ec   : > { %2371 = vmatprep.subr.bf16.mxu0 %v2826_v37  ;;  %2401 = vmatprep.subr.bf16.mxu1 %v2643_v9 }
 0x2ed   : > { %1543 = vmatprep.mubr.f32.mxu0 %v2644_v17  ;;  %2132 = vmatprep.mubr.msk.f32.mxu1 %vm2645_vm0, %v2644_v17 }
 0x2ef   : > { %2373 = vmatpush1.bf16.msra.mxu0 %v2833_v44  ;;  %2403 = vmatpush3.bf16.msra.mxu1 %v2835_v45 }
 0x2f0   : > { %2375 = vmatprep.subr.bf16.mxu0 %v2839_v47  ;;  %2404 = vmatprep.subr.bf16.mxu1 %v2643_v9 }
 0x2f3   : > { %2377 = vmatpush1.bf16.msra.mxu0 %v2846_v53  ;;  %2406 = vmatpush3.bf16.msra.mxu1 %v2848_v54 }
 0x2f4   : > { %2379 = vmatprep.subr.bf16.mxu0 %v2852_v56  ;;  %2407 = vmatprep.subr.bf16.mxu1 %v2643_v9 }
 0x2f7   : > { %2381 = vmatpush1.bf16.msra.mxu0 %v2856_v62  ;;  %2409 = vmatpush3.bf16.msra.mxu1 %v2858_v63 }
 0x2f8   : > { %2383 = vmatprep.subr.bf16.mxu0 %v2862_v1  ;;  %2410 = vmatprep.subr.bf16.mxu1 %v2643_v9  ;;  %v1320_v1 = vstv %s1319_s10 }
 0x2f9   : > { %vm1321_vm8 = vcmp.eq.s32.totalorder %v1320_v1, 1 }
 0x2fb   : > { %2385 = vmatpush1.bf16.msra.mxu0 %v2866_v7  ;;  %2412 = vmatpush3.bf16.msra.mxu1 %v2868_v11 }
 0x2fc   : > { %2387 = vmatprep.subr.bf16.mxu0 %v2872_v13  ;;  %2413 = vmatprep.subr.bf16.mxu1 %v2643_v9 }
 0x2ff   : > { %2389 = vmatpush1.bf16.msra.mxu0 %v2876_v27  ;;  %2415 = vmatpush3.bf16.msra.mxu1 %v2878_v28 }
 0x300   : > { %2391 = vmatprep.subr.bf16.mxu0 %v2882_v30  ;;  %2416 = vmatprep.subr.bf16.mxu1 %v2643_v9 }
 0x303   : > { %2393 = vmatpush1.bf16.msra.mxu0 %v2886_v39  ;;  %2418 = vmatpush3.bf16.msra.mxu1 %v2888_v40 }
 0x304   : > { %2395 = vmatprep.subr.bf16.mxu0 %v2892_v42  ;;  %2419 = vmatprep.subr.bf16.mxu1 %v2643_v9 }
 0x307   : > { %2397 = vmatpush1.bf16.msra.mxu0 %v2896_v49  ;;  %2421 = vmatpush3.bf16.msra.mxu1 %v2898_v50 }
 0x308   : > { %2422 = vmatprep.subr.bf16.mxu0 (!%p1852_p12), %v2646_v8 }
 0x3b6   : > { %v1220_v15 = vpop.f32.mrb[4].mxu0  ;;  %v1291_v17 = vpop.f32.mrb[10].mxu1 }
 0x3b7   : > { %v1844_v19 = vmul.f32 -1.442695, %v1220_v15  ;;  %v1222_v20 = vpop.f32.mrb[5].mxu0  ;;  %v2090_v21 = vpop.f32.mrb[11].mxu1  ;;  %v1309_v47 = vadd.f32 %v1291_v17, %v2968_v25  ;;  %v1665_v15 = vld [vmem:[%s3183_s4 + $0x58] sm:$0xff] (!%p1852_p12) }
 0x3b8   : > { %v1845_v26 = vmul.f32 -1.442695, %v1222_v20  ;;  %v2438_v17 = vpack.c.bf16 (!%p1852_p12), %v1665_v15, %v1664_v14  ;;  %v1667_v20 = vld [vmem:[%s3183_s4 + $0x68] sm:$0xff] (!%p1852_p12) }
 0x3b9   : > { %2528 = vpow2.f32 %v1844_v19  ;;  %v1666_v19 = vld [vmem:[%s3183_s4 + $0x60] sm:$0xff] (!%p1852_p12) }
 0x3ba   : > { %2530 = vpow2.f32 %v1845_v26  ;;  %v2441_v21 = vpack.c.bf16 (!%p1852_p12), %v1667_v20, %v1666_v19  ;;  %v1668_v26 = vld [vmem:[%s3183_s4 + $0x70] sm:$0xff] (!%p1852_p12) }
 0x3bc   : > { %v1475_v34 = vpop.f32.mrb[12].mxu1 }
 0x3bd   : > { %v2099_v35 = vpop.f32.mrb[13].mxu1 }
 0x3c3   : > { %v2529_v37 = vpop.eup %2528 }
 0x3c4   : > { %v1299_v44 = vadd.f32 1.0, %v2529_v37  ;;  %v2531_v9 = vpop.eup %2530 }
 0x3c5   : > { %v1306_v45 = vadd.f32 1.0, %v2531_v9 }
 0x3c6   : > { %2532 = vrcp.f32 %v1299_v44  ;;  %v1670_v44 = vld [vmem:[#allocation3] sm:$0x1] (!%p1852_p12) }
 0x3c7   : > { %2534 = vrcp.f32 %v1306_v45 }
 0x3d0   : > { %v2533_v53 = vpop.eup %2532 }
 0x3d1   : > { %v1310_v54 = vmul.f32 %v2533_v53, %v1309_v47  ;;  %v2535_v62 = vpop.eup %2534 }
 0x3d2   : > { %v1313_v63 = vsub.f32 1.0, %v2535_v62  ;;  %v1315_v13 = vmul.f32 %v2535_v62, %v3035_v51 }
 0x3d3   : > { %v1311_v56 = vadd.f32 %v1310_v54, %v1150_v10 }
 0x3d5   : > { %2536 = vtanh.f32 %v1311_v56 }
 0x3df   : > { %v2537_v7 = vpop.eup %2536 }
 0x3e0   : > { %v1314_v11 = vmul.f32 %v2537_v7, %v1313_v63 }
 0x3e2   : > { %v1316_v27 = vadd.f32 %v1315_v13, %v1314_v11 }
 0x3e4   : > { %v1322_v28 = vsel %vm1321_vm8, %v1316_v27, %v3035_v51  ;;  %v1662_v51 = vld [vmem:[%s3183_s4 + $0x40] sm:$0xff] (!%p1852_p12) }
 0x3e5   : > { %1544 = vmatmul.mubr.f32.vlgmr.msra.gmra.mrb[6].mxu0 %v1322_v28  ;;  %2133 = vmatmul.mubr.f32.vlgmr.msra.gmra.mrb[14].mxu1 %v1322_v28  ;;  %v2435_v10 = vpack.c.bf16 (!%p1852_p12), %v1663_v24, %v1662_v51 }
 0x3e6   : > { %2167 = vmatprep.mubr.msk.f32.mxu0 (!%p1852_p12), %vm2647_vm10, %v2648_v32 }
 0x4b8   : > { %v1545_v30 = vpop.f32.mrb[6].mxu0  ;;  %v1616_v39 = vpop.f32.mrb[14].mxu1 }
 0x4b9   : > { %v1850_v40 = vmul.f32 -1.442695, %v1545_v30  ;;  %v1547_v42 = vpop.f32.mrb[7].mxu0  ;;  %v2134_v49 = vpop.f32.mrb[15].mxu1  ;;  %v1634_v58 = vadd.f32 %v1616_v39, %v2968_v25  ;;  %v1654_v25 = vld [vmem:[%s3183_s4] sm:$0xff] (!%p1852_p12) }
 0x4ba   : > { %v1851_v50 = vmul.f32 -1.442695, %v1547_v42  ;;  %v2423_v29 = vpack.c.bf16 (!%p1852_p12), %v1655_v22, %v1654_v25 }
 0x4bb   : > { %2538 = vpow2.f32 %v1850_v40 }
 0x4bc   : > { %2540 = vpow2.f32 %v1851_v50  ;;  %2424 = vmatpush3.bf16.msra.mxu0 (!%p1852_p12), %v2423_v29 }
 0x4bd   : > { %2425 = vmatprep.subr.bf16.mxu0 (!%p1852_p12), %v2646_v8 }
 0x4c0   : > { %2427 = vmatpush3.bf16.msra.mxu0 (!%p1852_p12), %v2426_v33 }
 0x4c1   : > { %2428 = vmatprep.subr.bf16.mxu0 (!%p1852_p12), %v2646_v8 }
 0x4c4   : > { %2430 = vmatpush3.bf16.msra.mxu0 (!%p1852_p12), %v2429_v41 }
 0x4c5   : > { %v2539_v12 = vpop.eup %2538  ;;  %2431 = vmatprep.subr.bf16.mxu0 (!%p1852_p12), %v2646_v8 }
 0x4c6   : > { %v1624_v55 = vadd.f32 1.0, %v2539_v12  ;;  %v2541_v57 = vpop.eup %2540 }
 0x4c7   : > { %v1631_v52 = vadd.f32 1.0, %v2541_v57 }
 0x4c8   : > { %2542 = vrcp.f32 %v1624_v55  ;;  %2433 = vmatpush3.bf16.msra.mxu0 (!%p1852_p12), %v2432_v48 }
 0x4c9   : > { %2544 = vrcp.f32 %v1631_v52  ;;  %2434 = vmatprep.subr.bf16.mxu0 (!%p1852_p12), %v2646_v8 }
 0x4cc   : > { %2436 = vmatpush3.bf16.msra.mxu0 (!%p1852_p12), %v2435_v10 }
 0x4cd   : > { %2437 = vmatprep.subr.bf16.mxu0 (!%p1852_p12), %v2646_v8 }
 0x4d0   : > { %2439 = vmatpush3.bf16.msra.mxu0 (!%p1852_p12), %v2438_v17 }
 0x4d1   : > { %2440 = vmatprep.subr.bf16.mxu0 (!%p1852_p12), %v2646_v8 }
 0x4d2   : > { %v2543_v59 = vpop.eup %2542 }
 0x4d3   : > { %v1635_v60 = vmul.f32 %v2543_v59, %v1634_v58  ;;  %v2545_v0 = vpop.eup %2544 }
 0x4d4   : > { %v1638_v2 = vsub.f32 1.0, %v2545_v0  ;;  %v1640_v6 = vmul.f32 %v2545_v0, %v1322_v28  ;;  %2442 = vmatpush3.bf16.msra.mxu0 (!%p1852_p12), %v2441_v21 }
 0x4d5   : > { %v1636_v61 = vadd.f32 %v1635_v60, %v1475_v34  ;;  %v1669_v34 = vld [vmem:[%s3183_s4 + $0x78] sm:$0xff] (!%p1852_p12)  ;;  %2443 = vmatprep.subr.bf16.mxu0 (!%p1852_p12), %v2646_v8 }
 0x4d6   : > { %v2444_v35 = vpack.c.bf16 (!%p1852_p12), %v1669_v34, %v1668_v26 }
 0x4d7   : > { %2546 = vtanh.f32 %v1636_v61 }
 0x4d8   : > { %2445 = vmatpush3.bf16.msra.mxu0 (!%p1852_p12), %v2444_v35 }
 0x4e1   : > { %v2547_v4 = vpop.eup %2546  ;;  %1652 = sbr.rel (%p1852_p12) target bundleno = 1504 (0x5e0), region = 56 }
 0x4e2   : > { %v1639_v5 = vmul.f32 %v2547_v4, %v1638_v2 }
 0x4e4   : > { %v1641_v16 = vadd.f32 %v1640_v6, %v1639_v5 }
 0x4e6   : > { %v1647_v18 = vsel %vm1646_vm9, %v1641_v16, %v1322_v28 }
 0x4e7   : > { %1648 = vst [vmem:[#allocation2] sm:$0x1] %v1647_v18 }
 0x4ee   : > { %v1653_v37 = vld [vmem:[#allocation2] sm:$0x1] }
 0x4ef   : > { %2168 = vmatmul.mubr.f32.vlgmr.msra.gmra.mrb[0].mxu0 %v1653_v37 }
 0x5c2   : > { %v1737_v9 = vpop.f32.mrb[0].mxu0 }
 0x5c3   : > { %v1738_v45 = vadd.f32 %v1737_v9, %v1670_v44  ;;  %v2169_v47 = vpop.f32.mrb[1].mxu0 }
 0x5c5   : > { %v1853_v53 = vmul.f32 -1.442695, %v1738_v45 }
 0x5c7   : > { %2548 = vpow2.f32 %v1853_v53 }
 0x5d1   : > { %v2549_v54 = vpop.eup %2548 }
 0x5d2   : > { %v1744_v56 = vadd.f32 1.0, %v2549_v54 }
 0x5d4   : > { %2550 = vrcp.f32 %v1744_v56 }
 0x5de   : > { %v2551_v62 = vpop.eup %2550 }
 0x5df   : > { %1748 = vst.msk [vmem:[#allocation7] sm:$0x1] %vm1747_vm11, %v2551_v62 }
 0x5e0 PF: > { %p3144_p13 = scmp.eq.s32.totalorder %s1820_s5, 1  ;;  %s2649_s30 = smov [#allocation7]  }
 0x5e1   : > { %s1758_s27 = sshll.u32 %s2649_s30, 4  ;;  %s1759_s27 = int_to_ptr.vmem [resolvable:$true] %s1758_s27 }
 0x5e2   : > { %s2580_s28 = scalar_lea.vmem %s1759_s27, 16  ;;  %s2586_s7 = scalar_lea.vmem %s1759_s27, 32 }
 0x5e3   : > { %p2581_p0 = scmp.ne.s32.totalorder %s1759_s27, %s2580_s28  ;;  %p2587_p5 = scmp.lt.s32.totalorder %s1759_s27, %s1759_s27 }
 0x5e4   : > { %p2588_p7 = scmp.lt.s32.totalorder %s2586_s7, %s2580_s28 }
 0x5e5   : > { %p2582_p1 = pnand %p2581_p0, %p3144_p13 }
 0x5e6   : > { %p2589_p9 = por %p2588_p7, %p2587_p5 }
 0x5e7   : > { %p2583_p2 = pneg %p2582_p1 }
 0x5e9   : > { %p2590_p3 = pnand %p2589_p9, %p2583_p2 }
 0x5eb   : > { %2593 = shalt.err (!%p2590_p3)
}
 0x5ec   : > { %s2594_s9 = scalar_lea.hbm %s3185_s6, 16 }
 0x5ed   : > { %p2595_p4 = scmp.ne.s32.totalorder %s3185_s6, %s2594_s9  ;;  %p2600_p10 = scmp.lt.u32.totalorder %s2594_s9, %s3185_s6 }
 0x5ef   : > { %p2596_p6 = pnand %p2595_p4, %p3144_p13 }
 0x5f1   : > { %p2597_p8 = pneg %p2596_p6 }
 0x5f3   : > { %p2602_p11 = pnand %p2600_p10, %p2597_p8 }
 0x5f5   : > { %2605 = shalt.err (!%p2602_p11)
}
 0x5f6   : > { %2459 = dma.vmem_to_hbm [thread:$0]  (%p3144_p13), %s1759_s27, 16, %s3185_s6, [#allocation6]  }
 0x5f7   : > { %2623 = dma.done.wait (%p3144_p13), [#allocation6], 16  }
 0x5f8   : > { %2625 = vsyncadd (%p3144_p13), [#allocation6], 4294967280 }
 0x5f9 PF: > { %s20_s25 = sadd.s32 1, %s2636_s25   ;;  %s3195_s23 = smov %s2632_s24 }
 0x5fa   : > { %p17_p12 = scmp.ge.s32.totalorder %s20_s25, 4   ;;  %s3196_s24 = smov %s3198_s26 }
 0x5fc   :  { %19 = sbr.rel (!%p17_p12) target bundleno = 6 (0x6), region = 88 }
 0x603   :  { %1771 = vsyncpa [#allocation5], 1 }
 0x604   :  { %1773 = vsyncpa [#allocation5 + $0x1], 1 }
 0x605   :  { %1774 = vsyncpa [#allocation6], 1 }
 0x606   :  { %1776 = vsyncpa [#allocation6 + $0x1], 1 }

</bundles_post_ra>
